<compile_context>
chip_gen: v7x
topology: tpu7x:2x2x1
jax: 0.10.0
libtpu: 0.0.40
codegen_flags: <defaults>
</compile_context>

<pallas_src>
import jax
import jax.numpy as jnp
from jax.experimental import pallas as pl
from jax.experimental.pallas import tpu as pltpu

_LANES = 128
_MAX_ROWS_PER_TILE = 512  # 512 * 128 = 65536 samples / grid step (~1.3 MB in)


def _mlp_kernel(p_ref, x_ref, o_ref):
    """Fused 3-layer MLP with batch on (sublane, lane).

    p_ref : SMEM f32[20]          flat params: w1(2,3) b1(2) w2(2,2) b2(2) w3(2,2) b3(2)
    x_ref : VMEM f32[3, R, 128]   input tile  (feature, batch_row, batch_lane)
    o_ref : VMEM f32[2, R, 128]   output tile (feature, batch_row, batch_lane)
    """
    x0 = x_ref[0]
    x1 = x_ref[1]
    x2 = x_ref[2]

    # fc1 + ReLU   (h1_j = relu(sum_k w1[j,k]*x_k + b1[j]))
    h1_0 = jnp.maximum(p_ref[0] * x0 + p_ref[1] * x1 + p_ref[2] * x2 + p_ref[6], 0.0)
    h1_1 = jnp.maximum(p_ref[3] * x0 + p_ref[4] * x1 + p_ref[5] * x2 + p_ref[7], 0.0)

    # fc2 + ReLU
    h2_0 = jnp.maximum(p_ref[8] * h1_0 + p_ref[9] * h1_1 + p_ref[12], 0.0)
    h2_1 = jnp.maximum(p_ref[10] * h1_0 + p_ref[11] * h1_1 + p_ref[13], 0.0)

    # fc3 (no activation) — two dense, unmasked [R,128] stores.
    o_ref[0] = p_ref[14] * h2_0 + p_ref[15] * h2_1 + p_ref[18]
    o_ref[1] = p_ref[16] * h2_0 + p_ref[17] * h2_1 + p_ref[19]


def make_params():
    """Deterministic parameters matching the PyTorch shapes/distributions.

    fc1: W (2,3), b (2,)  ~ U(-6, 6)
    fc2: W (2,2), b (2,)  ~ U(-6, 6)
    fc3: W fixed [[1,-1],[-1,1]], b fixed [0,0]
    """
    # TODO(synk): torch.manual_seed(44) initial values cannot be bit-reproduced
    # without torch; jax.random is used with identical shapes/distributions.
    key = jax.random.PRNGKey(44)
    k1, k2, k3, k4 = jax.random.split(key, 4)
    w1 = jax.random.uniform(k1, (2, 3), jnp.float32) * 12.0 - 6.0
    b1 = jax.random.uniform(k2, (2,), jnp.float32) * 12.0 - 6.0
    w2 = jax.random.uniform(k3, (2, 2), jnp.float32) * 12.0 - 6.0
    b2 = jax.random.uniform(k4, (2,), jnp.float32) * 12.0 - 6.0
    w3 = jnp.array([[1.0, -1.0], [-1.0, 1.0]], jnp.float32)
    b3 = jnp.array([0.0, 0.0], jnp.float32)

    # Flat-packed (row-major) parameter vector for the SMEM scalar prefetch.
    params_flat = jnp.concatenate(
        [w1.reshape(-1), b1, w2.reshape(-1), b2, w3.reshape(-1), b3]
    ).astype(jnp.float32)  # f32[20]

    raw = (w1, b1, w2, b2, w3, b3)  # for the pure-JAX reference
    return params_flat, raw


def simple3nn_forward(x, params_flat):
    """x: [B, 3] float32  ->  [B, 2] float32"""
    B = x.shape[0]
    rows_total = pl.cdiv(B, _LANES)  # batch rows of 128 lanes each
    if rows_total <= _MAX_ROWS_PER_TILE:
        rpt = rows_total  # single grid step; block equals full array dims
    else:
        rpt = _MAX_ROWS_PER_TILE  # multiple of 8 -> legal sublane tiling
    rows_padded = pl.cdiv(rows_total, rpt) * rpt
    Bp = rows_padded * _LANES

    # Batch-on-(sublane,lane) layout; zero-pad the extra batch columns
    # (padded columns are independent and sliced off afterwards).
    x_t = jnp.zeros((3, Bp), jnp.float32).at[:, :B].set(x.astype(jnp.float32).T)
    x_t = x_t.reshape(3, rows_padded, _LANES)

    grid_spec = pltpu.PrefetchScalarGridSpec(
        num_scalar_prefetch=1,  # params_flat -> SMEM
        grid=(rows_padded // rpt,),
        in_specs=[pl.BlockSpec((3, rpt, _LANES), lambda i, p: (0, i, 0))],
        out_specs=pl.BlockSpec((2, rpt, _LANES), lambda i, p: (0, i, 0)),
    )

    out_t = pl.pallas_call(
        _mlp_kernel,
        out_shape=jax.ShapeDtypeStruct((2, rows_padded, _LANES), jnp.float32),
        grid_spec=grid_spec,
        compiler_params=pltpu.CompilerParams(
            dimension_semantics=("parallel",),  # megacore split on v7x
        ),
    )(params_flat, x_t)

    return out_t.reshape(2, Bp)[:, :B].T


def _reference(x, raw):
    w1, b1, w2, b2, w3, b3 = raw
    h = jnp.maximum(x @ w1.T + b1, 0.0)
    h = jnp.maximum(h @ w2.T + b2, 0.0)
    return h @ w3.T + b3


if __name__ == "__main__":
    params_flat, raw = make_params()

    key = jax.random.PRNGKey(0)
    x = jax.random.normal(key, (8, 3), jnp.float32)  # batch=8, in_features=3

    out = simple3nn_forward(x, params_flat)
    out = jax.block_until_ready(out)

    ref = _reference(x, raw)
    assert out.shape == (8, 2), out.shape
    assert jnp.allclose(out, ref, atol=1e-5, rtol=1e-5), (out, ref)
    print("KERNEL_OK")
</pallas_src>

<mosaic_0001>
module attributes {stable_mosaic.version = 11 : i64} {
  func.func @_mlp_kernel(%arg0: i32, %arg1: memref<20xf32, #tpu.memory_space<smem>>, %arg2: memref<3x1x128xf32, #tpu.memory_space<vmem>>, %arg3: memref<2x1x128xf32, #tpu.memory_space<vmem>>) attributes {dimension_semantics = [#tpu.dimension_semantics<parallel>], iteration_bounds = array<i64: 1>, scalar_prefetch = 1 : i64, scratch_operands = 0 : i64, tpu.core_type = #tpu.core_type<tc>, window_params = [{transform_indices = @transform_0, window_bounds = array<i64: 3, 1, 128>}, {transform_indices = @transform_1, window_bounds = array<i64: 2, 1, 128>}]} {
    %c0 = arith.constant 0 : index
    %c0_0 = arith.constant 0 : index
    %c0_1 = arith.constant 0 : index
    %0 = vector.load %arg2[%c0, %c0_0, %c0_1] : memref<3x1x128xf32, #tpu.memory_space<vmem>>, vector<1x1x128xf32>
    %1 = vector.shape_cast %0 : vector<1x1x128xf32> to vector<1x128xf32>
    %c1 = arith.constant 1 : index
    %c0_2 = arith.constant 0 : index
    %c0_3 = arith.constant 0 : index
    %2 = vector.load %arg2[%c1, %c0_2, %c0_3] : memref<3x1x128xf32, #tpu.memory_space<vmem>>, vector<1x1x128xf32>
    %3 = vector.shape_cast %2 : vector<1x1x128xf32> to vector<1x128xf32>
    %c2 = arith.constant 2 : index
    %c0_4 = arith.constant 0 : index
    %c0_5 = arith.constant 0 : index
    %4 = vector.load %arg2[%c2, %c0_4, %c0_5] : memref<3x1x128xf32, #tpu.memory_space<vmem>>, vector<1x1x128xf32>
    %5 = vector.shape_cast %4 : vector<1x1x128xf32> to vector<1x128xf32>
    %c0_6 = arith.constant 0 : index
    %6 = memref.load %arg1[%c0_6] : memref<20xf32, #tpu.memory_space<smem>>
    %7 = vector.broadcast %6 : f32 to vector<1x128xf32>
    %8 = arith.mulf %7, %1 : vector<1x128xf32>
    %c1_7 = arith.constant 1 : index
    %9 = memref.load %arg1[%c1_7] : memref<20xf32, #tpu.memory_space<smem>>
    %10 = vector.broadcast %9 : f32 to vector<1x128xf32>
    %11 = arith.mulf %10, %3 : vector<1x128xf32>
    %12 = arith.addf %8, %11 : vector<1x128xf32>
    %c2_8 = arith.constant 2 : index
    %13 = memref.load %arg1[%c2_8] : memref<20xf32, #tpu.memory_space<smem>>
    %14 = vector.broadcast %13 : f32 to vector<1x128xf32>
    %15 = arith.mulf %14, %5 : vector<1x128xf32>
    %16 = arith.addf %12, %15 : vector<1x128xf32>
    %c6 = arith.constant 6 : index
    %17 = memref.load %arg1[%c6] : memref<20xf32, #tpu.memory_space<smem>>
    %18 = vector.broadcast %17 : f32 to vector<1x128xf32>
    %19 = arith.addf %16, %18 : vector<1x128xf32>
    %cst = arith.constant 0.000000e+00 : f32
    %20 = vector.broadcast %cst : f32 to vector<1x128xf32>
    %21 = arith.maximumf %19, %20 : vector<1x128xf32>
    %c3 = arith.constant 3 : index
    %22 = memref.load %arg1[%c3] : memref<20xf32, #tpu.memory_space<smem>>
    %23 = vector.broadcast %22 : f32 to vector<1x128xf32>
    %24 = arith.mulf %23, %1 : vector<1x128xf32>
    %c4 = arith.constant 4 : index
    %25 = memref.load %arg1[%c4] : memref<20xf32, #tpu.memory_space<smem>>
    %26 = vector.broadcast %25 : f32 to vector<1x128xf32>
    %27 = arith.mulf %26, %3 : vector<1x128xf32>
    %28 = arith.addf %24, %27 : vector<1x128xf32>
    %c5 = arith.constant 5 : index
    %29 = memref.load %arg1[%c5] : memref<20xf32, #tpu.memory_space<smem>>
    %30 = vector.broadcast %29 : f32 to vector<1x128xf32>
    %31 = arith.mulf %30, %5 : vector<1x128xf32>
    %32 = arith.addf %28, %31 : vector<1x128xf32>
    %c7 = arith.constant 7 : index
    %33 = memref.load %arg1[%c7] : memref<20xf32, #tpu.memory_space<smem>>
    %34 = vector.broadcast %33 : f32 to vector<1x128xf32>
    %35 = arith.addf %32, %34 : vector<1x128xf32>
    %cst_9 = arith.constant 0.000000e+00 : f32
    %36 = vector.broadcast %cst_9 : f32 to vector<1x128xf32>
    %37 = arith.maximumf %35, %36 : vector<1x128xf32>
    %c8 = arith.constant 8 : index
    %38 = memref.load %arg1[%c8] : memref<20xf32, #tpu.memory_space<smem>>
    %39 = vector.broadcast %38 : f32 to vector<1x128xf32>
    %40 = arith.mulf %39, %21 : vector<1x128xf32>
    %c9 = arith.constant 9 : index
    %41 = memref.load %arg1[%c9] : memref<20xf32, #tpu.memory_space<smem>>
    %42 = vector.broadcast %41 : f32 to vector<1x128xf32>
    %43 = arith.mulf %42, %37 : vector<1x128xf32>
    %44 = arith.addf %40, %43 : vector<1x128xf32>
    %c12 = arith.constant 12 : index
    %45 = memref.load %arg1[%c12] : memref<20xf32, #tpu.memory_space<smem>>
    %46 = vector.broadcast %45 : f32 to vector<1x128xf32>
    %47 = arith.addf %44, %46 : vector<1x128xf32>
    %cst_10 = arith.constant 0.000000e+00 : f32
    %48 = vector.broadcast %cst_10 : f32 to vector<1x128xf32>
    %49 = arith.maximumf %47, %48 : vector<1x128xf32>
    %c10 = arith.constant 10 : index
    %50 = memref.load %arg1[%c10] : memref<20xf32, #tpu.memory_space<smem>>
    %51 = vector.broadcast %50 : f32 to vector<1x128xf32>
    %52 = arith.mulf %51, %21 : vector<1x128xf32>
    %c11 = arith.constant 11 : index
    %53 = memref.load %arg1[%c11] : memref<20xf32, #tpu.memory_space<smem>>
    %54 = vector.broadcast %53 : f32 to vector<1x128xf32>
    %55 = arith.mulf %54, %37 : vector<1x128xf32>
    %56 = arith.addf %52, %55 : vector<1x128xf32>
    %c13 = arith.constant 13 : index
    %57 = memref.load %arg1[%c13] : memref<20xf32, #tpu.memory_space<smem>>
    %58 = vector.broadcast %57 : f32 to vector<1x128xf32>
    %59 = arith.addf %56, %58 : vector<1x128xf32>
    %cst_11 = arith.constant 0.000000e+00 : f32
    %60 = vector.broadcast %cst_11 : f32 to vector<1x128xf32>
    %61 = arith.maximumf %59, %60 : vector<1x128xf32>
    %c14 = arith.constant 14 : index
    %62 = memref.load %arg1[%c14] : memref<20xf32, #tpu.memory_space<smem>>
    %63 = vector.broadcast %62 : f32 to vector<1x128xf32>
    %64 = arith.mulf %63, %49 : vector<1x128xf32>
    %c15 = arith.constant 15 : index
    %65 = memref.load %arg1[%c15] : memref<20xf32, #tpu.memory_space<smem>>
    %66 = vector.broadcast %65 : f32 to vector<1x128xf32>
    %67 = arith.mulf %66, %61 : vector<1x128xf32>
    %68 = arith.addf %64, %67 : vector<1x128xf32>
    %c18 = arith.constant 18 : index
    %69 = memref.load %arg1[%c18] : memref<20xf32, #tpu.memory_space<smem>>
    %70 = vector.broadcast %69 : f32 to vector<1x128xf32>
    %71 = arith.addf %68, %70 : vector<1x128xf32>
    %c0_12 = arith.constant 0 : index
    %c0_13 = arith.constant 0 : index
    %c0_14 = arith.constant 0 : index
    %72 = vector.load %arg3[%c0_12, %c0_13, %c0_14] : memref<2x1x128xf32, #tpu.memory_space<vmem>>, vector<1x1x128xf32>
    %73 = vector.shape_cast %72 : vector<1x1x128xf32> to vector<1x128xf32>
    %74 = vector.shape_cast %71 : vector<1x128xf32> to vector<1x1x128xf32>
    tpu.vector_store %arg3[%c0_12, %c0_13, %c0_14], %74 {strides = array<i32>} : memref<2x1x128xf32, #tpu.memory_space<vmem>>, vector<1x1x128xf32>,
    %c16 = arith.constant 16 : index
    %75 = memref.load %arg1[%c16] : memref<20xf32, #tpu.memory_space<smem>>
    %76 = vector.broadcast %75 : f32 to vector<1x128xf32>
    %77 = arith.mulf %76, %49 : vector<1x128xf32>
    %c17 = arith.constant 17 : index
    %78 = memref.load %arg1[%c17] : memref<20xf32, #tpu.memory_space<smem>>
    %79 = vector.broadcast %78 : f32 to vector<1x128xf32>
    %80 = arith.mulf %79, %61 : vector<1x128xf32>
    %81 = arith.addf %77, %80 : vector<1x128xf32>
    %c19 = arith.constant 19 : index
    %82 = memref.load %arg1[%c19] : memref<20xf32, #tpu.memory_space<smem>>
    %83 = vector.broadcast %82 : f32 to vector<1x128xf32>
    %84 = arith.addf %81, %83 : vector<1x128xf32>
    %c1_15 = arith.constant 1 : index
    %c0_16 = arith.constant 0 : index
    %c0_17 = arith.constant 0 : index
    %85 = vector.load %arg3[%c1_15, %c0_16, %c0_17] : memref<2x1x128xf32, #tpu.memory_space<vmem>>, vector<1x1x128xf32>
    %86 = vector.shape_cast %85 : vector<1x1x128xf32> to vector<1x128xf32>
    %87 = vector.shape_cast %84 : vector<1x128xf32> to vector<1x1x128xf32>
    tpu.vector_store %arg3[%c1_15, %c0_16, %c0_17], %87 {strides = array<i32>} : memref<2x1x128xf32, #tpu.memory_space<vmem>>, vector<1x1x128xf32>,
    return
  }
  func.func @transform_0(%arg0: i32, %arg1: memref<20xf32, #tpu.memory_space<smem>>) -> (i32, i32, i32) {
    %c0_i32 = arith.constant 0 : i32
    %c0_i32_0 = arith.constant 0 : i32
    %c0_i32_1 = arith.constant 0 : i32
    return %c0_i32, %arg0, %c0_i32_0 : i32, i32, i32
  }
  func.func @transform_1(%arg0: i32, %arg1: memref<20xf32, #tpu.memory_space<smem>>) -> (i32, i32, i32) {
    %c0_i32 = arith.constant 0 : i32
    %c0_i32_0 = arith.constant 0 : i32
    %c0_i32_1 = arith.constant 0 : i32
    return %c0_i32, %arg0, %c0_i32_0 : i32, i32, i32
  }
}

</mosaic_0001>

<bundles_post_ra>
// kernel: tpu_custom_call.1
= control target key start
LH: loop header
LB: loop body
LE: loop exit
PB: predicated region body
PF: predicated region fallthrough
CT: control target
= control target key end

     0   :  { %s232_s0 = inlined_call_operand.hbm [shape: f32[20], index: 0, kind: input, shape index: {}]   ;;  %s233_s1 = inlined_call_operand.vmem [shape: f32[3,1,128], index: 1, kind: input, shape index: {}]   ;;  %s234_s2 = inlined_call_operand.hbm [shape: f32[2,1,128], index: 2, kind: output, shape index: {}]  }
   0x1   :  { %s135_s11 = scalar_lea.hbm %s232_s0, 16 }
   0x2   :  { %p136_p0 = scmp.ne.s32.totalorder %s232_s0, %s135_s11  ;;  %p139_p1 = scmp.lt.u32.totalorder %s135_s11, %s232_s0 }
   0x4   :  { %p141_p2 = pnand %p139_p1, %p136_p0 }
   0x6   :  { %144 = shalt.err (!%p141_p2)  }
   0x7   :  { %s171_s16 = smov [#allocation3]  }
   0x8   :  { %8 = dma.hbm_to_smem %s232_s0, 16, %s171_s16, [#allocation2] }
   0x9   :  { %167 = dma.done.wait [#allocation2], 16 }
   0xa   :  { %168 = vsyncadd [#allocation2], 4294967280 }
   0xb   :  { %10 = sfence }
   0xc   :  { %s19_s19 = sld [smem:[#allocation3]]  ;;  %s112_s20 = sld [smem:[#allocation3 + $0x1]] }
   0xd   :  { %11 = vsyncpa [#allocation5], 0  ;;  %s113_s21 = sld [smem:[#allocation3 + $0x2]]  ;;  %s202_s22 = sld [smem:[#allocation3 + $0x6]]  ;;  %v14_v0 = vld [vmem:[%s233_s1] sm:$0x1] }
   0xe   :  { %s115_s23 = sld [smem:[#allocation3 + $0x3]]  ;;  %s116_s24 = sld [smem:[#allocation3 + $0x4]]  ;;  %v110_v1 = vld [vmem:[%s233_s1 + $0x1] sm:$0x1]  ;;  %v111_v2 = vld [vmem:[%s233_s1 + $0x2] sm:$0x1] }
   0xf   :  { %s117_s25 = sld [smem:[#allocation3 + $0x5]]  ;;  %s118_s0 = sld [smem:[#allocation3 + $0x7]] }
  0x10   :  { %s213_s4 = sld [smem:[#allocation3 + $0x8]]  ;;  %s215_s5 = sld [smem:[#allocation3 + $0xa]] }
  0x11   :  { %s120_s6 = sld [smem:[#allocation3 + $0x9]]  ;;  %s123_s7 = sld [smem:[#allocation3 + $0xb]] }
  0x12   :  { %v20_v3 = vstv %s19_s19  ;;  %v23_v4 = vstv %s112_s20  ;;  %s121_s1 = sld [smem:[#allocation3 + $0xc]]  ;;  %s124_s8 = sld [smem:[#allocation3 + $0xd]] }
  0x13   :  { %v21_v5 = vmul.f32 %v20_v3, %v14_v0  ;;  %v24_v6 = vmul.f32 %v110_v1, %v23_v4  ;;  %v27_v7 = vstv %s113_s21  ;;  %v31_v15 = vstv %s202_s22  ;;  %s125_s9 = sld [smem:[#allocation3 + $0xe]]  ;;  %s126_s10 = sld [smem:[#allocation3 + $0xf]] }
  0x14   :  { %v28_v8 = vmul.f32 %v111_v2, %v27_v7  ;;  %v35_v9 = vstv %s115_s23  ;;  %v38_v10 = vstv %s116_s24  ;;  %s128_s11 = sld [smem:[#allocation3 + $0x10]]  ;;  %s129_s12 = sld [smem:[#allocation3 + $0x11]] }
  0x15   :  { %v25_v11 = vadd.f32 %v24_v6, %v21_v5  ;;  %v36_v12 = vmul.f32 %v35_v9, %v14_v0  ;;  %v39_v13 = vmul.f32 %v110_v1, %v38_v10  ;;  %v42_v14 = vstv %s117_s25  ;;  %s127_s13 = sld [smem:[#allocation3 + $0x12]]  ;;  %s130_s14 = sld [smem:[#allocation3 + $0x13]] }
  0x16   :  { %v43_v16 = vmul.f32 %v111_v2, %v42_v14  ;;  %v46_v19 = vstv %s118_s0  ;;  %v50_v22 = vstv %s213_s4  ;;  %v61_v23 = vstv %s215_s5  ;;  %s172_s15 = smov [#allocation4]  }
  0x17   :  { %v29_v17 = vadd.f32 %v28_v8, %v25_v11  ;;  %v40_v18 = vadd.f32 %v39_v13, %v36_v12  ;;  %v53_v26 = vstv %s120_s6  ;;  %v64_v27 = vstv %s123_s7  ;;  %s99_s16 = sshll.u32 %s172_s15, 4  ;;  %s100_s16 = int_to_ptr.vmem [resolvable:$true] %s99_s16 }
  0x18   :  { %v57_v33 = vstv %s121_s1  ;;  %v68_v34 = vstv %s124_s8  ;;  %s145_s17 = scalar_lea.vmem %s100_s16, 32  ;;  %p150_p4 = scmp.lt.s32.totalorder %s100_s16, %s100_s16 }
  0x19   :  { %v32_v20 = vadd.f32 %v31_v15, %v29_v17  ;;  %v44_v21 = vadd.f32 %v43_v16, %v40_v18  ;;  %v72_v39 = vstv %s125_s9  ;;  %v75_v40 = vstv %s126_s10  ;;  %p146_p3 = scmp.ne.s32.totalorder %s100_s16, %s145_s17  ;;  %p151_p5 = scmp.lt.s32.totalorder %s145_s17, %s145_s17 }
  0x1a   :  { %v83_v41 = vstv %s128_s11  ;;  %v86_v42 = vstv %s129_s12 }
  0x1b   :  { %v33_v24 = vmax.f32 %v32_v20, 0.0  ;;  %v47_v25 = vadd.f32 %v46_v19, %v44_v21  ;;  %v79_v49 = vstv %s127_s13  ;;  %v90_v50 = vstv %s130_s14  ;;  %p152_p6 = por %p151_p5, %p150_p4 }
  0x1d   :  { %v48_v28 = vmax.f32 %v47_v25, 0.0  ;;  %v51_v29 = vmul.f32 %v50_v22, %v33_v24  ;;  %v62_v30 = vmul.f32 %v61_v23, %v33_v24  ;;  %p153_p7 = pnand %p152_p6, %p146_p3 }
  0x1f   :  { %v54_v31 = vmul.f32 %v53_v26, %v48_v28  ;;  %v65_v32 = vmul.f32 %v64_v27, %v48_v28 }
  0x21   :  { %v55_v35 = vadd.f32 %v54_v31, %v51_v29  ;;  %v66_v36 = vadd.f32 %v65_v32, %v62_v30 }
  0x23   :  { %v58_v37 = vadd.f32 %v57_v33, %v55_v35  ;;  %v69_v38 = vadd.f32 %v68_v34, %v66_v36 }
  0x25   :  { %v59_v43 = vmax.f32 %v58_v37, 0.0  ;;  %v70_v44 = vmax.f32 %v69_v38, 0.0 }
  0x27   :  { %v73_v45 = vmul.f32 %v72_v39, %v59_v43  ;;  %v76_v46 = vmul.f32 %v75_v40, %v70_v44  ;;  %v84_v47 = vmul.f32 %v83_v41, %v59_v43  ;;  %v87_v48 = vmul.f32 %v86_v42, %v70_v44 }
  0x29   :  { %v77_v51 = vadd.f32 %v76_v46, %v73_v45  ;;  %v88_v52 = vadd.f32 %v87_v48, %v84_v47 }
  0x2b   :  { %v80_v53 = vadd.f32 %v79_v49, %v77_v51  ;;  %v91_v54 = vadd.f32 %v90_v50, %v88_v52 }
  0x2d   :  { %81 = vst [vmem:[#allocation4] sm:$0x1] %v80_v53  ;;  %93 = vst [vmem:[#allocation4 + $0x1] sm:$0x1] %v91_v54 }
  0x2e   :  { %156 = shalt.err (!%p153_p7)
}
  0x2f   :  { %s157_s20 = scalar_lea.hbm %s234_s2, 32 }
  0x30   :  { %p158_p8 = scmp.ne.s32.totalorder %s234_s2, %s157_s20  ;;  %p161_p9 = scmp.lt.u32.totalorder %s157_s20, %s234_s2 }
  0x32   :  { %p163_p10 = pnand %p161_p9, %p158_p8 }
  0x34   :  { %166 = shalt.err (!%p163_p10)
}
  0x35   :  { %s173_s25 = smov 16   ;;  %s174_s26 = smov 1  }
  0x36   :  { %105 = dma.vmem_to_hbm [thread:$0]  %s100_s16, 32, %s234_s2, [#allocation5], %s173_s25, %s173_s25, %s174_s26  }
  0x37   :  { %169 = dma.done.wait [#allocation5], 32  }
  0x38   :  { %170 = vsyncadd [#allocation5], 4294967264 }
  0x39   :  { %109 = vsyncpa [#allocation5], 1 }

</bundles_post_ra>
